<compile_context>
chip_gen: v7x
topology: tpu7x:2x2x1
jax: 0.10.0
libtpu: 0.0.40
codegen_flags: <defaults>
</compile_context>

<pallas_src>
import functools

import jax
import jax.numpy as jnp
from jax.experimental import pallas as pl
from jax.experimental.pallas import tpu as pltpu


def _round_up(x: int, m: int) -> int:
    return ((x + m - 1) // m) * m


def _cdiv(a: int, b: int) -> int:
    return -(-a // b)


def _dot_nt(a, b):
    # (m, k) x (n, k) -> (m, n): contract the last dims of both operands
    # (no wrapper transpose of item_emb; f32 MXU accumulation).
    return jax.lax.dot_general(
        a, b,
        dimension_numbers=(((1,), (1,)), ((), ())),
        preferred_element_type=jnp.float32)


def _scores_kernel_2d(u_ref, it_ref, o_ref):
    # Whole contraction (tk == E) in one shot: no revisits, no accumulator.
    o_ref[...] = _dot_nt(u_ref[...], it_ref[...]).astype(o_ref.dtype)


def _scores_kernel_3d(u_ref, it_ref, o_ref):
    # Fallback for very large E: accumulate directly into the f32 output block
    # (same (i, j) block across the k axis) — no VMEM scratch needed.
    @pl.when(pl.program_id(2) == 0)
    def _():
        o_ref[...] = jnp.zeros_like(o_ref)

    o_ref[...] += _dot_nt(u_ref[...], it_ref[...])


def gar_forward(id_embedding, user_tensor, item_tensor, *,
                compute_dtype=None, tm_max=512, tn_max=1024,
                vmem_budget_bytes=20 * 2**20):
    """Pallas implementation of GARRec.forward (scores = user_emb @ item_emb.T)."""
    # Embedding-table gathers stay in plain JAX.
    # TODO(synk): fuse the gathers into the kernel (scalar-prefetch the index
    # vectors + manual per-row DMA gather from the HBM table) to remove the HBM
    # round trip of materializing user_emb / item_emb.
    user_emb = jnp.take(id_embedding, user_tensor, axis=0)   # (U, E)
    item_emb = jnp.take(id_embedding, item_tensor, axis=0)   # (I, E)

    if compute_dtype is not None:
        user_emb = user_emb.astype(compute_dtype)
        item_emb = item_emb.astype(compute_dtype)

    U, E = user_emb.shape
    I = item_emb.shape[0]
    in_isz = jnp.dtype(user_emb.dtype).itemsize
    out_isz = 4                                    # scores stay f32 (module semantics)
    sub = {4: 8, 2: 16, 1: 32}.get(in_isz, 8)      # dtype-aware sublane alignment

    tm_max = max(sub, (tm_max // sub) * sub)
    tn_max = max(128, (tn_max // 128) * 128)

    # A block dim is either the full array dim (single block; always a legal
    # block shape) or an aligned tile <= dim (multi-block; Pallas masks the
    # ragged edge block, which is safe because K is never ragged).
    tm = U if U <= tm_max else tm_max
    tn = I if I <= tn_max else tn_max

    def vmem_need(tm_, tn_, tk_):
        # double-buffered input tiles + double-buffered output tile
        return 2 * (tm_ * tk_ + tn_ * tk_) * in_isz + 2 * tm_ * tn_ * out_isz

    # Prefer the 2-D grid (tk = E); fall back to a 3-D reduction grid only if
    # even minimal M/N tiles cannot hold a full-E block in VMEM.
    use_2d = vmem_need(sub, 128, E) <= vmem_budget_bytes
    tk = E if use_2d else 512

    def shrink(tile, dim, align):
        cand = max(align, ((tile // 2) // align) * align)
        return cand if (cand < tile and cand <= dim) else None

    while vmem_need(tm, tn, tk) > vmem_budget_bytes:
        new_tn = shrink(tn, I, 128)
        if new_tn is not None:
            tn = new_tn
            continue
        new_tm = shrink(tm, U, sub)
        if new_tm is not None:
            tm = new_tm
            continue
        break

    gm, gn = _cdiv(U, tm), _cdiv(I, tn)

    # v7x megacore: keep at least 2 blocks on the parallel axes when possible.
    if gm * gn == 1:
        if I >= 2 * 128:
            tn = _round_up(_cdiv(I, 2), 128)
            gn = _cdiv(I, tn)
        elif U >= 2 * sub:
            tm = _round_up(_cdiv(U, 2), sub)
            gm = _cdiv(U, tm)

    vmem_limit = int(min(max(2 * vmem_need(tm, tn, tk), 16 * 2**20), 32 * 2**20))

    if use_2d:
        cost = pl.CostEstimate(
            flops=2 * U * I * E,
            transcendentals=0,
            bytes_accessed=(U * E * in_isz * gn      # LHS re-read per n tile
                            + I * E * in_isz * gm    # RHS re-read per m tile
                            + U * I * out_isz))      # output written exactly once
        return pl.pallas_call(
            _scores_kernel_2d,
            out_shape=jax.ShapeDtypeStruct((U, I), jnp.float32),
            grid_spec=pltpu.PrefetchScalarGridSpec(
                num_scalar_prefetch=0,
                grid=(gm, gn),
                in_specs=[
                    pl.BlockSpec((tm, E), lambda i, j: (i, 0)),
                    pl.BlockSpec((tn, E), lambda i, j: (j, 0)),
                ],
                out_specs=pl.BlockSpec((tm, tn), lambda i, j: (i, j)),
            ),
            compiler_params=pltpu.CompilerParams(
                dimension_semantics=("parallel", "parallel"),
                vmem_limit_bytes=vmem_limit),
            cost_estimate=cost,
        )(user_emb, item_emb)

    # ---- 3-D fallback (E too large for one block): pad the K dim only. ----
    E_pad = _round_up(E, tk)
    lhs = jnp.zeros((U, E_pad), user_emb.dtype).at[:, :E].set(user_emb)
    rhs = jnp.zeros((I, E_pad), item_emb.dtype).at[:, :E].set(item_emb)
    gk = E_pad // tk

    cost = pl.CostEstimate(
        flops=2 * U * I * E_pad,
        transcendentals=0,
        bytes_accessed=(U * E_pad * in_isz * gn
                        + I * E_pad * in_isz * gm
                        + U * I * out_isz))
    return pl.pallas_call(
        _scores_kernel_3d,
        out_shape=jax.ShapeDtypeStruct((U, I), jnp.float32),
        grid_spec=pltpu.PrefetchScalarGridSpec(
            num_scalar_prefetch=0,
            grid=(gm, gn, gk),
            in_specs=[
                pl.BlockSpec((tm, tk), lambda i, j, k: (i, k)),
                pl.BlockSpec((tn, tk), lambda i, j, k: (j, k)),
            ],
            out_specs=pl.BlockSpec((tm, tn), lambda i, j, k: (i, j)),
        ),
        compiler_params=pltpu.CompilerParams(
            dimension_semantics=("parallel", "parallel", "arbitrary"),
            vmem_limit_bytes=vmem_limit),
        cost_estimate=cost,
    )(lhs, rhs)


def xavier_normal(key, shape):
    fan_in, fan_out = shape[1], shape[0]
    std = jnp.sqrt(2.0 / (fan_in + fan_out))
    return std * jax.random.normal(key, shape, dtype=jnp.float32)


if __name__ == "__main__":
    # Small, deterministic synthetic setup consistent with the module's __init__.
    num_user, num_item, dim_E = 8, 16, 32

    key = jax.random.PRNGKey(0)
    k_emb, _ = jax.random.split(key)

    # id_embedding: nn.Parameter(xavier_normal(rand(num_user+num_item, dim_E)))
    id_embedding = xavier_normal(k_emb, (num_user + num_item, dim_E))
    # TODO(synk): generator / policy_net MLP weights are unused by forward(),
    # so they are not materialized (loss / select_negatives not implemented).

    user_tensor = jnp.arange(num_user, dtype=jnp.int32)                # (8,)
    item_tensor = num_user + jnp.arange(num_item, dtype=jnp.int32)     # (16,)

    ref = id_embedding[user_tensor] @ id_embedding[item_tensor].T

    # f32 path (bit-matches the PyTorch module's forward semantics).
    fwd = jax.jit(gar_forward)
    scores = jax.block_until_ready(fwd(id_embedding, user_tensor, item_tensor))
    assert scores.shape == (num_user, num_item)
    assert jnp.allclose(scores, ref, atol=1e-5, rtol=1e-5)

    # Opt-in bf16-operand path (recommended on v5e/v6e/v7x when the precision
    # trade-off is acceptable); accumulation stays f32 inside the kernel.
    fwd_bf16 = jax.jit(functools.partial(gar_forward, compute_dtype=jnp.bfloat16))
    scores_bf16 = jax.block_until_ready(
        fwd_bf16(id_embedding, user_tensor, item_tensor))
    assert jnp.allclose(scores_bf16, ref, atol=3e-2, rtol=3e-2)

    print("KERNEL_OK")
</pallas_src>

<mosaic_0001>
module attributes {stable_mosaic.version = 11 : i64} {
  func.func @_scores_kernel_2d(%arg0: i32, %arg1: i32, %arg2: memref<8x32xf32, #tpu.memory_space<vmem>>, %arg3: memref<16x32xf32, #tpu.memory_space<vmem>>, %arg4: memref<8x16xf32, #tpu.memory_space<vmem>>) attributes {dimension_semantics = [#tpu.dimension_semantics<parallel>, #tpu.dimension_semantics<parallel>], iteration_bounds = array<i64: 1, 1>, scalar_prefetch = 0 : i64, scratch_operands = 0 : i64, tpu.core_type = #tpu.core_type<tc>, window_params = [{transform_indices = @transform_0, window_bounds = array<i64: 8, 32>}, {transform_indices = @transform_1, window_bounds = array<i64: 16, 32>}, {transform_indices = @transform_2, window_bounds = array<i64: 8, 16>}]} {
    %c0 = arith.constant 0 : index
    %c0_0 = arith.constant 0 : index
    %0 = vector.load %arg2[%c0, %c0_0] : memref<8x32xf32, #tpu.memory_space<vmem>>, vector<8x32xf32>
    %c0_1 = arith.constant 0 : index
    %c0_2 = arith.constant 0 : index
    %1 = vector.load %arg3[%c0_1, %c0_2] : memref<16x32xf32, #tpu.memory_space<vmem>>, vector<16x32xf32>
    %cst = arith.constant dense<0.000000e+00> : vector<8x16xf32>
    %2 = tpu.matmul %0, %1, %cst {dimension_numbers = #tpu.dot_dimension_numbers<[1], [1], [0], [0], [0, 0, 1, 0], [], []>} : vector<8x32xf32>, vector<16x32xf32>, vector<8x16xf32> -> vector<8x16xf32>
    %c0_3 = arith.constant 0 : index
    %c0_4 = arith.constant 0 : index
    %3 = vector.load %arg4[%c0_3, %c0_4] : memref<8x16xf32, #tpu.memory_space<vmem>>, vector<8x16xf32>
    tpu.vector_store %arg4[%c0_3, %c0_4], %2 {strides = array<i32>} : memref<8x16xf32, #tpu.memory_space<vmem>>, vector<8x16xf32>,
    return
  }
  func.func @transform_0(%arg0: i32, %arg1: i32) -> (i32, i32) {
    %c0_i32 = arith.constant 0 : i32
    %c0_i32_0 = arith.constant 0 : i32
    return %arg0, %c0_i32 : i32, i32
  }
  func.func @transform_1(%arg0: i32, %arg1: i32) -> (i32, i32) {
    %c0_i32 = arith.constant 0 : i32
    %c0_i32_0 = arith.constant 0 : i32
    return %arg1, %c0_i32 : i32, i32
  }
  func.func @transform_2(%arg0: i32, %arg1: i32) -> (i32, i32) {
    %c0_i32 = arith.constant 0 : i32
    return %arg0, %arg1 : i32, i32
  }
}

</mosaic_0001>

<bundles_post_ra>
// kernel: gar_forward.1
= control target key start
LH: loop header
LB: loop body
LE: loop exit
PB: predicated region body
PF: predicated region fallthrough
CT: control target
= control target key end

     0   :  { %vm15_vm0 = vcmask 261120   ;;  %v156_v2 = vmov 0.0|0.0   ;;  %vm157_vm2 = vmmov 0   ;;  %v158_v4 = vmov 0.0   ;;  %s196_s0 = inlined_call_operand.vmem [shape: f32[8,32], index: 0, kind: input, shape index: {}]   ;;  %s197_s1 = inlined_call_operand.vmem [shape: f32[16,32], index: 1, kind: input, shape index: {}]   ;;  %s198_s2 = inlined_call_operand.hbm [shape: f32[8,16], index: 2, kind: output, shape index: {}]  }
   0x1   :  { %v13_v0 = vld [vmem:[%s197_s1] sm:$0xff]  ;;  %v14_v1 = vld [vmem:[%s197_s1 + $0x8] sm:$0xff]  ;;  %124 = vmatprep.subr.bf16.mxu0 %v156_v2  ;;  %vm126_vm1 = vmpackc.low %vm15_vm0, %vm15_vm0  ;;  %121 = vmatprep.mubr.msk.f32.mxu0 %vm157_vm2, %v158_v4 }
   0x2   :  { %v125_v3 = vpack.c.bf16 %v14_v1, %v13_v0 }
   0x3   :  { %7 = vsyncpa [#allocation3], 0  ;;  %v12_v5 = vld [vmem:[%s196_s0] sm:$0xff]  ;;  %s159_s15 = smov [#allocation2]   ;;  %vm95_vm3 = vcmask 130048  }
   0x4   :  { %127 = vmatpush3.bf16.xpose.msk.msra.mxu0 %vm126_vm1, %v125_v3  ;;  %s103_s16 = sshll.u32 %s159_s15, 4  ;;  %s104_s16 = int_to_ptr.vmem [resolvable:$true] %s103_s16 }
   0x5   :  { %s132_s1 = scalar_lea.vmem %s104_s16, 128  ;;  %p137_p1 = scmp.lt.s32.totalorder %s104_s16, %s104_s16 }
   0x6   :  { %p133_p0 = scmp.ne.s32.totalorder %s104_s16, %s132_s1  ;;  %p138_p2 = scmp.lt.s32.totalorder %s132_s1, %s132_s1 }
   0x8   :  { %p139_p3 = por %p138_p2, %p137_p1 }
   0xa   :  { %p140_p4 = pnand %p139_p3, %p133_p0 }
   0xb   :  { %122 = vmatmul.mubr.msk.f32.vlgmr.msra.gmra.mrb[0].mxu0 %vm15_vm0, %v12_v5 }
  0xde   :  { %v91_v6 = vpop.f32.mrb[0].mxu0 }
  0xdf   :  { %96 = vst.msk [vmem:[#allocation2] sm:$0xff] %vm95_vm3, %v91_v6  ;;  %v123_v7 = vpop.f32.mrb[1].mxu0 }
  0xe0   :  { %143 = shalt.err (!%p140_p4)
}
  0xe1   :  { %s144_s19 = scalar_lea.hbm %s198_s2, 128 }
  0xe2   :  { %p145_p5 = scmp.ne.s32.totalorder %s198_s2, %s144_s19  ;;  %p148_p6 = scmp.lt.u32.totalorder %s144_s19, %s198_s2 }
  0xe4   :  { %p150_p7 = pnand %p148_p6, %p145_p5 }
  0xe6   :  { %153 = shalt.err (!%p150_p7)
}
  0xe7   :  { %106 = dma.vmem_to_hbm [thread:$0]  %s104_s16, 128, %s198_s2, [#allocation3]  }
  0xe8   :  { %154 = dma.done.wait [#allocation3], 128  }
  0xe9   :  { %155 = vsyncadd [#allocation3], 4294967168 }
  0xea   :  { %110 = vsyncpa [#allocation3], 1 }

</bundles_post_ra>
